<compile_context>
chip_gen: v7x
topology: tpu7x:2x2x1
jax: 0.10.0
libtpu: 0.0.40
codegen_flags: <defaults>
</compile_context>

<pallas_src>
import jax
import jax.numpy as jnp
from jax.experimental import pallas as pl
from jax.experimental.pallas import tpu as pltpu


def _round_up(x: int, n: int) -> int:
    return ((x + n - 1) // n) * n


def _cdiv(a: int, b: int) -> int:
    return (a + b - 1) // b


def _vmem_capacity_bytes() -> int:
    """Per-TensorCore VMEM capacity; conservative fallback if query fails."""
    try:
        cap = getattr(pltpu.get_tpu_info(), "vmem_capacity_bytes", None)
        if cap:
            return int(cap)
    except Exception:
        pass
    return 64 * 1024 * 1024   # v7x per-TC size; safe lower bound for v5e/v6e.


def _make_kernel(compute_dtype):
    def kernel(x_ref, w1_ref, b1_ref, w2_ref, b2_ref, o_ref, acc_ref):
        # x: (TM, Cp)  w1: (Cp, TH)  b1: (1, TH)  w2: (TH, Cp)  b2: (1, Cp)
        j = pl.program_id(1)

        @pl.when(j == 0)
        def _init():
            acc_ref[...] = jnp.zeros_like(acc_ref)

        # Cast x in VMEM (kernel DMAs original dtype; no extra wrapper pass).
        x = x_ref[...].astype(compute_dtype)
        h = jnp.dot(x, w1_ref[...], preferred_element_type=jnp.float32) + b1_ref[...]
        # LeakyReLU (negative_slope = 0.01): single VPU max, exact, in f32.
        h = jnp.maximum(h, 0.01 * h)
        acc_ref[...] += jnp.dot(h.astype(compute_dtype), w2_ref[...],
                                preferred_element_type=jnp.float32)

        @pl.when(j == pl.num_programs(1) - 1)
        def _finalize():
            o_ref[...] = (acc_ref[...] + b2_ref[...]).astype(o_ref.dtype)

    return kernel


def mlp_pallas(x, w1, b1, w2, b2, *, block_m=512, compute_dtype=jnp.bfloat16,
               out_dtype=None, lane_pad=128, hidden_block=None):
    """Fused MLP forward: LeakyReLU(x @ w1 + b1) @ w2 + b2.

    x: (..., C_in).  w1: (C_in, H), b1: (1, H), w2: (H, C_in), b2: (1, C_in).
    Returns shape (..., C_in), dtype `out_dtype` (default: x.dtype).
    `lane_pad=256` can help on v6e/v7x (2x256x256 MXU) when C/H land in 129-255.
    """
    orig_shape = x.shape
    out_dtype = x.dtype if out_dtype is None else out_dtype
    c_in = orig_shape[-1]
    hidden = w1.shape[-1]

    # ---- pad channel / hidden dims to lane multiples (lane-dense stores) ----
    c_pad = _round_up(c_in, lane_pad)
    h_pad = _round_up(hidden, lane_pad)
    b1_2d = jnp.reshape(b1, (1, hidden)).astype(jnp.float32)
    b2_2d = jnp.reshape(b2, (1, c_in)).astype(jnp.float32)
    if (c_pad, h_pad) != (c_in, hidden):
        w1 = jnp.pad(w1, ((0, c_pad - c_in), (0, h_pad - hidden)))
        w2 = jnp.pad(w2, ((0, h_pad - hidden), (0, c_pad - c_in)))
        b1_2d = jnp.pad(b1_2d, ((0, 0), (0, h_pad - hidden)))
        b2_2d = jnp.pad(b2_2d, ((0, 0), (0, c_pad - c_in)))
    # Weights cast once in the wrapper (read-once); x is NOT cast here.
    w1_c = w1.astype(compute_dtype)
    w2_c = w2.astype(compute_dtype)

    x2d = x.reshape(-1, c_in)
    m = x2d.shape[0]
    if c_pad != c_in:
        x2d = jnp.pad(x2d, ((0, 0), (0, c_pad - c_in)))

    # ---- generation-aware VMEM budget ---------------------------------------
    vmem_cap = _vmem_capacity_bytes()
    budget = int(0.70 * vmem_cap)
    x_b = jnp.dtype(x2d.dtype).itemsize
    o_b = jnp.dtype(out_dtype).itemsize
    c_b = jnp.dtype(compute_dtype).itemsize

    def working_set(tm, th, w_bufs):
        return (w_bufs * 2 * c_pad * th * c_b       # w1 + w2 blocks
                + w_bufs * (th + c_pad) * 4         # b1 + b2 blocks (f32)
                + 2 * tm * c_pad * x_b              # double-buffered x tiles
                + 2 * tm * c_pad * o_b              # double-buffered out tiles
                + tm * c_pad * 4)                   # f32 accumulator scratch

    # Hidden-block candidates: multiples of lane_pad dividing h_pad, largest first.
    th_candidates = [d for d in range(h_pad, 0, -lane_pad) if h_pad % d == 0]
    if hidden_block is not None:
        assert hidden_block % lane_pad == 0 and h_pad % hidden_block == 0
        th_candidates = [hidden_block]

    tm0 = max(8, min(_round_up(block_m, 8), _round_up(m, 8)))
    choice = None
    for th_c in th_candidates:
        w_bufs = 1 if th_c == h_pad else 2          # resident vs. streamed weights
        t = tm0
        while t > 8 and working_set(t, th_c, w_bufs) > budget:
            t = max(8, _round_up(t // 2, 8))
        if working_set(t, th_c, w_bufs) > budget:
            continue
        if t >= min(tm0, 256):                       # decent TM with this residency
            choice = (t, th_c, w_bufs)
            break
        if choice is None or t > choice[0]:
            choice = (t, th_c, w_bufs)
    if choice is None:                               # pathological widths; best effort
        choice = (8, th_candidates[-1], 2)
    tm, th, w_bufs = choice

    # Rebalance TM against the grid count so M-remainder padding is < 8 rows/tile.
    m_tiles = _cdiv(m, tm)
    tm = min(tm, _round_up(_cdiv(m, m_tiles), 8))
    m_pad = m_tiles * tm
    if m_pad != m:
        x2d = jnp.pad(x2d, ((0, m_pad - m), (0, 0)))
    h_tiles = h_pad // th

    # vmem limit covers the double-buffered-weights fallback, capped per generation.
    ws_conservative = working_set(tm, th, 2)
    vmem_limit = int(min(max(int(1.25 * ws_conservative), 8 * 1024 * 1024),
                         int(0.85 * vmem_cap)))

    kernel = _make_kernel(compute_dtype)
    grid = (m_tiles, h_tiles)
    out_shape = jax.ShapeDtypeStruct((m_pad, c_pad), out_dtype)
    scratch = [pltpu.VMEM((tm, c_pad), jnp.float32)]
    cparams = pltpu.CompilerParams(
        # M axis "parallel" (shards across the 2 TCs on v7x megacore, harmless on
        # v5e/v6e); hidden axis is an accumulation -> "arbitrary", innermost.
        dimension_semantics=("parallel", "arbitrary"),
        vmem_limit_bytes=vmem_limit,
    )

    def run(single_buffer_weights):
        if single_buffer_weights and w_bufs == 1:
            wkw = dict(pipeline_mode=pl.Buffered(1))   # resident: no double buffer
        else:
            wkw = {}
        in_specs = [
            pl.BlockSpec((tm, c_pad), lambda i, j: (i, 0)),            # x tile
            pl.BlockSpec((c_pad, th), lambda i, j: (0, j), **wkw),     # w1 block
            pl.BlockSpec((1, th), lambda i, j: (0, j), **wkw),         # b1 block
            pl.BlockSpec((th, c_pad), lambda i, j: (j, 0), **wkw),     # w2 block
            pl.BlockSpec((1, c_pad), lambda i, j: (0, 0), **wkw),      # b2
        ]
        out_specs = pl.BlockSpec((tm, c_pad), lambda i, j: (i, 0))
        return pl.pallas_call(
            kernel,
            out_shape=out_shape,
            grid=grid,
            in_specs=in_specs,
            out_specs=out_specs,
            scratch_shapes=scratch,
            compiler_params=cparams,
        )(x2d, w1_c, b1_2d, w2_c, b2_2d)

    try:
        out = run(True)
    except Exception:
        # Fallback for JAX builds that reject pipeline_mode=pl.Buffered(1).
        out = run(False)

    out = out[:m, :c_in]
    return out.reshape(orig_shape[:-1] + (c_in,))

    # TODO(synk): explicit pltpu.CORE_PARALLEL / pl.core_map split of the M axis
    # for guaranteed 2-TC balance on v7x (plain "parallel" is used for now).


def init_mlp_params(key, in_channels, widening_factor=2):
    """PyTorch nn.Linear default init: U(-1/sqrt(fan_in), +1/sqrt(fan_in))."""
    hidden = in_channels * widening_factor
    k1, k2, k3, k4 = jax.random.split(key, 4)
    bound1 = 1.0 / jnp.sqrt(in_channels)
    bound2 = 1.0 / jnp.sqrt(hidden)
    # Stored transposed relative to torch (torch weight is (out, in)); math identical.
    w1 = jax.random.uniform(k1, (in_channels, hidden), jnp.float32, -bound1, bound1)
    b1 = jax.random.uniform(k2, (1, hidden), jnp.float32, -bound1, bound1)
    w2 = jax.random.uniform(k3, (hidden, in_channels), jnp.float32, -bound2, bound2)
    b2 = jax.random.uniform(k4, (1, in_channels), jnp.float32, -bound2, bound2)
    return w1, b1, w2, b2


def mlp_reference(x, w1, b1, w2, b2):
    h = x @ w1 + b1[0]
    h = jnp.where(h >= 0, h, 0.01 * h)
    return h @ w2 + b2[0]


if __name__ == "__main__":
    key = jax.random.PRNGKey(0)

    # --- Test 1: module demo shape (resident weights, single hidden block) ---
    in_channels, widening_factor = 32, 2
    batch, seq = 2, 8
    k_x, k_p, key = jax.random.split(key, 3)
    x = jax.random.normal(k_x, (batch, seq, in_channels), jnp.float32)
    w1, b1, w2, b2 = init_mlp_params(k_p, in_channels, widening_factor)
    ref = mlp_reference(x.reshape(-1, in_channels), w1, b1, w2, b2).reshape(x.shape)

    out_f32 = jax.block_until_ready(
        mlp_pallas(x, w1, b1, w2, b2, compute_dtype=jnp.float32))
    assert out_f32.shape == x.shape and out_f32.dtype == x.dtype
    assert jnp.allclose(out_f32, ref, atol=1e-5, rtol=1e-5), "f32 path mismatch"

    out_bf16 = jax.block_until_ready(mlp_pallas(x, w1, b1, w2, b2))
    assert out_bf16.shape == x.shape
    assert jnp.allclose(out_bf16, ref, atol=3e-2, rtol=3e-2), "bf16 path mismatch"

    # --- Test 2: streamed-hidden path (hidden as grid axis + accumulator) ----
    in_channels2, widening2 = 96, 4        # hidden = 384 -> 3 blocks of 128
    batch2, seq2 = 2, 40                   # m = 80, exercises TM rebalance
    k_x2, k_p2 = jax.random.split(key)
    x2 = jax.random.normal(k_x2, (batch2, seq2, in_channels2), jnp.float32)
    p2 = init_mlp_params(k_p2, in_channels2, widening2)
    ref2 = mlp_reference(x2.reshape(-1, in_channels2), *p2).reshape(x2.shape)

    out2 = jax.block_until_ready(
        mlp_pallas(x2, *p2, compute_dtype=jnp.float32, hidden_block=128))
    assert out2.shape == x2.shape
    assert jnp.allclose(out2, ref2, atol=1e-4, rtol=1e-4), "streamed path mismatch"

    print("KERNEL_OK")
</pallas_src>

<mosaic_0001>
module attributes {stable_mosaic.version = 11 : i64} {
  func.func @kernel(%arg0: i32, %arg1: i32, %arg2: memref<16x128xf32, #tpu.memory_space<vmem>>, %arg3: memref<128x128xf32, #tpu.memory_space<vmem>>, %arg4: memref<1x128xf32, #tpu.memory_space<vmem>>, %arg5: memref<128x128xf32, #tpu.memory_space<vmem>>, %arg6: memref<1x128xf32, #tpu.memory_space<vmem>>, %arg7: memref<16x128xf32, #tpu.memory_space<vmem>>, %arg8: memref<16x128xf32, #tpu.memory_space<vmem>>) attributes {dimension_semantics = [#tpu.dimension_semantics<parallel>, #tpu.dimension_semantics<arbitrary>], iteration_bounds = array<i64: 1, 1>, scalar_prefetch = 0 : i64, scratch_operands = 1 : i64, tpu.core_type = #tpu.core_type<tc>, window_params = [{transform_indices = @transform_0, window_bounds = array<i64: 16, 128>}, {pipeline_mode = #tpu.pipeline_mode<synchronous>, transform_indices = @transform_1, window_bounds = array<i64: 128, 128>}, {pipeline_mode = #tpu.pipeline_mode<synchronous>, transform_indices = @transform_2, window_bounds = array<i64: 1, 128>}, {pipeline_mode = #tpu.pipeline_mode<synchronous>, transform_indices = @transform_3, window_bounds = array<i64: 128, 128>}, {pipeline_mode = #tpu.pipeline_mode<synchronous>, transform_indices = @transform_4, window_bounds = array<i64: 1, 128>}, {transform_indices = @transform_5, window_bounds = array<i64: 16, 128>}]} {
    %c0_i32 = arith.constant 0 : i32
    %0 = arith.cmpi eq, %arg1, %c0_i32 : i32
    %1 = arith.extui %0 : i1 to i32
    %c0_i32_0 = arith.constant 0 : i32
    %2 = arith.cmpi ne, %1, %c0_i32_0 : i32
    scf.if %2 {
      %cst_16 = arith.constant 0.000000e+00 : f32
      %20 = vector.broadcast %cst_16 : f32 to vector<16x128xf32>
      %c0_17 = arith.constant 0 : index
      %c0_18 = arith.constant 0 : index
      %21 = vector.load %arg8[%c0_17, %c0_18] : memref<16x128xf32, #tpu.memory_space<vmem>>, vector<16x128xf32>
      tpu.vector_store %arg8[%c0_17, %c0_18], %20 {strides = array<i32>} : memref<16x128xf32, #tpu.memory_space<vmem>>, vector<16x128xf32>,
    } else {
    }
    %c0 = arith.constant 0 : index
    %c0_1 = arith.constant 0 : index
    %3 = vector.load %arg2[%c0, %c0_1] : memref<16x128xf32, #tpu.memory_space<vmem>>, vector<16x128xf32>
    %c0_2 = arith.constant 0 : index
    %c0_3 = arith.constant 0 : index
    %4 = vector.load %arg3[%c0_2, %c0_3] : memref<128x128xf32, #tpu.memory_space<vmem>>, vector<128x128xf32>
    %cst = arith.constant dense<0.000000e+00> : vector<16x128xf32>
    %5 = tpu.matmul %3, %4, %cst {dimension_numbers = #tpu.dot_dimension_numbers<[1], [0], [0], [1], [0, 0, 1, 1], [], []>} : vector<16x128xf32>, vector<128x128xf32>, vector<16x128xf32> -> vector<16x128xf32>
    %c0_4 = arith.constant 0 : index
    %c0_5 = arith.constant 0 : index
    %6 = vector.load %arg4[%c0_4, %c0_5] : memref<1x128xf32, #tpu.memory_space<vmem>>, vector<1x128xf32>
    %7 = vector.broadcast %6 : vector<1x128xf32> to vector<16x128xf32>
    %8 = arith.addf %5, %7 : vector<16x128xf32>
    %cst_6 = arith.constant 0.00999999977 : f32
    %9 = vector.broadcast %cst_6 : f32 to vector<16x128xf32>
    %10 = arith.mulf %9, %8 : vector<16x128xf32>
    %11 = arith.maximumf %8, %10 : vector<16x128xf32>
    %c0_7 = arith.constant 0 : index
    %c0_8 = arith.constant 0 : index
    %12 = vector.load %arg8[%c0_7, %c0_8] : memref<16x128xf32, #tpu.memory_space<vmem>>, vector<16x128xf32>
    %c0_9 = arith.constant 0 : index
    %c0_10 = arith.constant 0 : index
    %13 = vector.load %arg5[%c0_9, %c0_10] : memref<128x128xf32, #tpu.memory_space<vmem>>, vector<128x128xf32>
    %cst_11 = arith.constant dense<0.000000e+00> : vector<16x128xf32>
    %14 = tpu.matmul %11, %13, %cst_11 {dimension_numbers = #tpu.dot_dimension_numbers<[1], [0], [0], [1], [0, 0, 1, 1], [], []>} : vector<16x128xf32>, vector<128x128xf32>, vector<16x128xf32> -> vector<16x128xf32>
    %15 = arith.addf %12, %14 : vector<16x128xf32>
    %c0_12 = arith.constant 0 : index
    %c0_13 = arith.constant 0 : index
    %16 = vector.load %arg8[%c0_12, %c0_13] : memref<16x128xf32, #tpu.memory_space<vmem>>, vector<16x128xf32>
    tpu.vector_store %arg8[%c0_12, %c0_13], %15 {strides = array<i32>} : memref<16x128xf32, #tpu.memory_space<vmem>>, vector<16x128xf32>,
    %c0_i32_14 = arith.constant 0 : i32
    %17 = arith.cmpi eq, %arg1, %c0_i32_14 : i32
    %18 = arith.extui %17 : i1 to i32
    %c0_i32_15 = arith.constant 0 : i32
    %19 = arith.cmpi ne, %18, %c0_i32_15 : i32
    scf.if %19 {
      %c0_16 = arith.constant 0 : index
      %c0_17 = arith.constant 0 : index
      %20 = vector.load %arg8[%c0_16, %c0_17] : memref<16x128xf32, #tpu.memory_space<vmem>>, vector<16x128xf32>
      %c0_18 = arith.constant 0 : index
      %c0_19 = arith.constant 0 : index
      %21 = vector.load %arg6[%c0_18, %c0_19] : memref<1x128xf32, #tpu.memory_space<vmem>>, vector<1x128xf32>
      %22 = vector.broadcast %21 : vector<1x128xf32> to vector<16x128xf32>
      %23 = arith.addf %20, %22 : vector<16x128xf32>
      %c0_20 = arith.constant 0 : index
      %c0_21 = arith.constant 0 : index
      %24 = vector.load %arg7[%c0_20, %c0_21] : memref<16x128xf32, #tpu.memory_space<vmem>>, vector<16x128xf32>
      tpu.vector_store %arg7[%c0_20, %c0_21], %23 {strides = array<i32>} : memref<16x128xf32, #tpu.memory_space<vmem>>, vector<16x128xf32>,
    } else {
    }
    return
  }
  func.func @transform_0(%arg0: i32, %arg1: i32) -> (i32, i32) {
    %c0_i32 = arith.constant 0 : i32
    %c0_i32_0 = arith.constant 0 : i32
    return %arg0, %c0_i32 : i32, i32
  }
  func.func @transform_1(%arg0: i32, %arg1: i32) -> (i32, i32) {
    %c0_i32 = arith.constant 0 : i32
    %c0_i32_0 = arith.constant 0 : i32
    return %c0_i32, %arg1 : i32, i32
  }
  func.func @transform_2(%arg0: i32, %arg1: i32) -> (i32, i32) {
    %c0_i32 = arith.constant 0 : i32
    %c0_i32_0 = arith.constant 0 : i32
    return %c0_i32, %arg1 : i32, i32
  }
  func.func @transform_3(%arg0: i32, %arg1: i32) -> (i32, i32) {
    %c0_i32 = arith.constant 0 : i32
    %c0_i32_0 = arith.constant 0 : i32
    return %arg1, %c0_i32 : i32, i32
  }
  func.func @transform_4(%arg0: i32, %arg1: i32) -> (i32, i32) {
    %c0_i32 = arith.constant 0 : i32
    %c0_i32_0 = arith.constant 0 : i32
    %c0_i32_1 = arith.constant 0 : i32
    return %c0_i32, %c0_i32_0 : i32, i32
  }
  func.func @transform_5(%arg0: i32, %arg1: i32) -> (i32, i32) {
    %c0_i32 = arith.constant 0 : i32
    %c0_i32_0 = arith.constant 0 : i32
    return %arg0, %c0_i32 : i32, i32
  }
}

module attributes {stable_mosaic.version = 11 : i64} {
  func.func @kernel(%arg0: i32, %arg1: i32, %arg2: memref<16x128xf32, #tpu.memory_space<vmem>>, %arg3: memref<128x128xf32, #tpu.memory_space<vmem>>, %arg4: memref<1x128xf32, #tpu.memory_space<vmem>>, %arg5: memref<128x128xf32, #tpu.memory_space<vmem>>, %arg6: memref<1x128xf32, #tpu.memory_space<vmem>>, %arg7: memref<16x128xf32, #tpu.memory_space<vmem>>, %arg8: memref<16x128xf32, #tpu.memory_space<vmem>>) attributes {dimension_semantics = [#tpu.dimension_semantics<parallel>, #tpu.dimension_semantics<arbitrary>], iteration_bounds = array<i64: 1, 1>, scalar_prefetch = 0 : i64, scratch_operands = 1 : i64, tpu.core_type = #tpu.core_type<tc>, window_params = [{transform_indices = @transform_0, window_bounds = array<i64: 16, 128>}, {transform_indices = @transform_1, window_bounds = array<i64: 128, 128>}, {transform_indices = @transform_2, window_bounds = array<i64: 1, 128>}, {transform_indices = @transform_3, window_bounds = array<i64: 128, 128>}, {pipeline_mode = #tpu.pipeline_mode<synchronous>, transform_indices = @transform_4, window_bounds = array<i64: 1, 128>}, {transform_indices = @transform_5, window_bounds = array<i64: 16, 128>}]} {
    %c0_i32 = arith.constant 0 : i32
    %0 = arith.cmpi eq, %arg1, %c0_i32 : i32
    %1 = arith.extui %0 : i1 to i32
    %c0_i32_0 = arith.constant 0 : i32
    %2 = arith.cmpi ne, %1, %c0_i32_0 : i32
    scf.if %2 {
      %cst_16 = arith.constant 0.000000e+00 : f32
      %20 = vector.broadcast %cst_16 : f32 to vector<16x128xf32>
      %c0_17 = arith.constant 0 : index
      %c0_18 = arith.constant 0 : index
      %21 = vector.load %arg8[%c0_17, %c0_18] : memref<16x128xf32, #tpu.memory_space<vmem>>, vector<16x128xf32>
      tpu.vector_store %arg8[%c0_17, %c0_18], %20 {strides = array<i32>} : memref<16x128xf32, #tpu.memory_space<vmem>>, vector<16x128xf32>,
    } else {
    }
    %c0 = arith.constant 0 : index
    %c0_1 = arith.constant 0 : index
    %3 = vector.load %arg2[%c0, %c0_1] : memref<16x128xf32, #tpu.memory_space<vmem>>, vector<16x128xf32>
    %c0_2 = arith.constant 0 : index
    %c0_3 = arith.constant 0 : index
    %4 = vector.load %arg3[%c0_2, %c0_3] : memref<128x128xf32, #tpu.memory_space<vmem>>, vector<128x128xf32>
    %cst = arith.constant dense<0.000000e+00> : vector<16x128xf32>
    %5 = tpu.matmul %3, %4, %cst {dimension_numbers = #tpu.dot_dimension_numbers<[1], [0], [0], [1], [0, 0, 1, 1], [], []>} : vector<16x128xf32>, vector<128x128xf32>, vector<16x128xf32> -> vector<16x128xf32>
    %c0_4 = arith.constant 0 : index
    %c0_5 = arith.constant 0 : index
    %6 = vector.load %arg4[%c0_4, %c0_5] : memref<1x128xf32, #tpu.memory_space<vmem>>, vector<1x128xf32>
    %7 = vector.broadcast %6 : vector<1x128xf32> to vector<16x128xf32>
    %8 = arith.addf %5, %7 : vector<16x128xf32>
    %cst_6 = arith.constant 0.00999999977 : f32
    %9 = vector.broadcast %cst_6 : f32 to vector<16x128xf32>
    %10 = arith.mulf %9, %8 : vector<16x128xf32>
    %11 = arith.maximumf %8, %10 : vector<16x128xf32>
    %c0_7 = arith.constant 0 : index
    %c0_8 = arith.constant 0 : index
    %12 = vector.load %arg8[%c0_7, %c0_8] : memref<16x128xf32, #tpu.memory_space<vmem>>, vector<16x128xf32>
    %c0_9 = arith.constant 0 : index
    %c0_10 = arith.constant 0 : index
    %13 = vector.load %arg5[%c0_9, %c0_10] : memref<128x128xf32, #tpu.memory_space<vmem>>, vector<128x128xf32>
    %cst_11 = arith.constant dense<0.000000e+00> : vector<16x128xf32>
    %14 = tpu.matmul %11, %13, %cst_11 {dimension_numbers = #tpu.dot_dimension_numbers<[1], [0], [0], [1], [0, 0, 1, 1], [], []>} : vector<16x128xf32>, vector<128x128xf32>, vector<16x128xf32> -> vector<16x128xf32>
    %15 = arith.addf %12, %14 : vector<16x128xf32>
    %c0_12 = arith.constant 0 : index
    %c0_13 = arith.constant 0 : index
    %16 = vector.load %arg8[%c0_12, %c0_13] : memref<16x128xf32, #tpu.memory_space<vmem>>, vector<16x128xf32>
    tpu.vector_store %arg8[%c0_12, %c0_13], %15 {strides = array<i32>} : memref<16x128xf32, #tpu.memory_space<vmem>>, vector<16x128xf32>,
    %c0_i32_14 = arith.constant 0 : i32
    %17 = arith.cmpi eq, %arg1, %c0_i32_14 : i32
    %18 = arith.extui %17 : i1 to i32
    %c0_i32_15 = arith.constant 0 : i32
    %19 = arith.cmpi ne, %18, %c0_i32_15 : i32
    scf.if %19 {
      %c0_16 = arith.constant 0 : index
      %c0_17 = arith.constant 0 : index
      %20 = vector.load %arg8[%c0_16, %c0_17] : memref<16x128xf32, #tpu.memory_space<vmem>>, vector<16x128xf32>
      %c0_18 = arith.constant 0 : index
      %c0_19 = arith.constant 0 : index
      %21 = vector.load %arg6[%c0_18, %c0_19] : memref<1x128xf32, #tpu.memory_space<vmem>>, vector<1x128xf32>
      %22 = vector.broadcast %21 : vector<1x128xf32> to vector<16x128xf32>
      %23 = arith.addf %20, %22 : vector<16x128xf32>
      %c0_20 = arith.constant 0 : index
      %c0_21 = arith.constant 0 : index
      %24 = vector.load %arg7[%c0_20, %c0_21] : memref<16x128xf32, #tpu.memory_space<vmem>>, vector<16x128xf32>
      tpu.vector_store %arg7[%c0_20, %c0_21], %23 {strides = array<i32>} : memref<16x128xf32, #tpu.memory_space<vmem>>, vector<16x128xf32>,
    } else {
    }
    return
  }
  func.func @transform_0(%arg0: i32, %arg1: i32) -> (i32, i32) {
    %c0_i32 = arith.constant 0 : i32
    %c0_i32_0 = arith.constant 0 : i32
    return %arg0, %c0_i32 : i32, i32
  }
  func.func @transform_1(%arg0: i32, %arg1: i32) -> (i32, i32) {
    %c0_i32 = arith.constant 0 : i32
    %c0_i32_0 = arith.constant 0 : i32
    return %c0_i32, %arg1 : i32, i32
  }
  func.func @transform_2(%arg0: i32, %arg1: i32) -> (i32, i32) {
    %c0_i32 = arith.constant 0 : i32
    %c0_i32_0 = arith.constant 0 : i32
    return %c0_i32, %arg1 : i32, i32
  }
  func.func @transform_3(%arg0: i32, %arg1: i32) -> (i32, i32) {
    %c0_i32 = arith.constant 0 : i32
    %c0_i32_0 = arith.constant 0 : i32
    return %arg1, %c0_i32 : i32, i32
  }
  func.func @transform_4(%arg0: i32, %arg1: i32) -> (i32, i32) {
    %c0_i32 = arith.constant 0 : i32
    %c0_i32_0 = arith.constant 0 : i32
    %c0_i32_1 = arith.constant 0 : i32
    return %c0_i32, %c0_i32_0 : i32, i32
  }
  func.func @transform_5(%arg0: i32, %arg1: i32) -> (i32, i32) {
    %c0_i32 = arith.constant 0 : i32
    %c0_i32_0 = arith.constant 0 : i32
    return %arg0, %c0_i32 : i32, i32
  }
}

</mosaic_0001>

<bundles_post_ra>
// kernel: tpu_custom_call.1
= control target key start
LH: loop header
LB: loop body
LE: loop exit
PB: predicated region body
PF: predicated region fallthrough
CT: control target
= control target key end

     0   :  { %10 = vsyncpa [#allocation4], 0  ;;  %s684_s0 = inlined_call_operand.hbm [shape: f32[16,128], index: 0, kind: input, shape index: {}]   ;;  %s685_s1 = inlined_call_operand.hbm [shape: f32[128,128], index: 1, kind: input, shape index: {}]   ;;  %s686_s2 = inlined_call_operand.vmem [shape: f32[1,128], index: 2, kind: input, shape index: {}]   ;;  %s687_s3 = inlined_call_operand.hbm [shape: f32[128,128], index: 3, kind: input, shape index: {}]   ;;  %s688_s4 = inlined_call_operand.vmem [shape: f32[1,128], index: 4, kind: input, shape index: {}]   ;;  %s689_s5 = inlined_call_operand.hbm [shape: f32[16,128], index: 5, kind: output, shape index: {}]  }
   0x1   :  { %11 = vsyncpa [#allocation7], 0 }
   0x2   :  { %12 = vsyncpa [#allocation5], 0  ;;  %s575_s18 = smov [#allocation6]   ;;  %s576_s20 = smov [#allocation3]  }
   0x3   :  { %s30_s19 = sshll.u32 %s575_s18, 4  ;;  %s18_s21 = sshll.u32 %s576_s20, 4  ;;  %s31_s19 = int_to_ptr.vmem [resolvable:$true] %s30_s19  ;;  %s611_s21 = int_to_ptr.vmem [resolvable:$true] %s18_s21 }
   0x4   :  { %s481_s24 = scalar_lea.hbm %s685_s1, 2048 }
   0x5   :  { %p482_p0 = scmp.ne.s32.totalorder %s685_s1, %s481_s24  ;;  %p485_p1 = scmp.lt.u32.totalorder %s481_s24, %s685_s1 }
   0x7   :  { %p487_p2 = pnand %p485_p1, %p482_p0 }
   0x9   :  { %490 = shalt.err (!%p487_p2)
}
   0xa   :  { %s491_s29 = scalar_lea.vmem %s31_s19, 2048  ;;  %p496_p4 = scmp.lt.s32.totalorder %s31_s19, %s31_s19 }
   0xb   :  { %p492_p3 = scmp.ne.s32.totalorder %s31_s19, %s491_s29  ;;  %p497_p5 = scmp.lt.s32.totalorder %s491_s29, %s491_s29 }
   0xd   :  { %p498_p6 = por %p497_p5, %p496_p4 }
   0xf   :  { %p499_p7 = pnand %p498_p6, %p492_p3 }
  0x11   :  { %502 = shalt.err (!%p499_p7)
}
  0x12   :  { %s577_s30 = smov 128   ;;  %s578_s6 = smov 8  }
  0x13   :  { %36 = dma.hbm_to_vmem [thread:$0]  %s685_s1, 2048, %s31_s19, [#allocation7], %s577_s30, %s577_s30, %s578_s6  }
  0x14   :  { %s503_s11 = scalar_lea.hbm %s684_s0, 256 }
  0x15   :  { %p504_p8 = scmp.ne.s32.totalorder %s684_s0, %s503_s11  ;;  %p507_p9 = scmp.lt.u32.totalorder %s503_s11, %s684_s0 }
  0x17   :  { %p509_p10 = pnand %p507_p9, %p504_p8 }
  0x19   :  { %512 = shalt.err (!%p509_p10)
}
  0x1a   :  { %s513_s16 = scalar_lea.vmem %s611_s21, 256  ;;  %p518_p12 = scmp.lt.s32.totalorder %s611_s21, %s611_s21 }
  0x1b   :  { %p514_p11 = scmp.ne.s32.totalorder %s611_s21, %s513_s16  ;;  %p519_p13 = scmp.lt.s32.totalorder %s513_s16, %s513_s16 }
  0x1d   :  { %p520_p0 = por %p519_p13, %p518_p12 }
  0x1f   :  { %p521_p1 = pnand %p520_p0, %p514_p11 }
  0x21   :  { %524 = shalt.err (!%p521_p1)
}
  0x22   :  { %24 = dma.hbm_to_vmem [thread:$0]  %s684_s0, 256, %s611_s21, [#allocation4], %s577_s30, %s577_s30, %s578_s6  }
  0x23   :  { %s579_s18 = smov [#allocation8]   ;;  %s525_s23 = scalar_lea.hbm %s687_s3, 2048 }
  0x24   :  { %s44_s19 = sshll.u32 %s579_s18, 4  ;;  %p526_p2 = scmp.ne.s32.totalorder %s687_s3, %s525_s23  ;;  %s45_s19 = int_to_ptr.vmem [resolvable:$true] %s44_s19 }
  0x25   :  { %p529_p3 = scmp.lt.u32.totalorder %s525_s23, %s687_s3 }
  0x27   :  { %p531_p4 = pnand %p529_p3, %p526_p2 }
  0x29   :  { %534 = shalt.err (!%p531_p4)
}
  0x2a   :  { %s535_s28 = scalar_lea.vmem %s45_s19, 2048  ;;  %p540_p6 = scmp.lt.s32.totalorder %s45_s19, %s45_s19 }
  0x2b   :  { %p536_p5 = scmp.ne.s32.totalorder %s45_s19, %s535_s28  ;;  %p541_p7 = scmp.lt.s32.totalorder %s535_s28, %s535_s28 }
  0x2d   :  { %p542_p8 = por %p541_p7, %p540_p6 }
  0x2f   :  { %p543_p9 = pnand %p542_p8, %p536_p5 }
  0x31   :  { %546 = shalt.err (!%p543_p9)
}
  0x32   :  { %50 = dma.hbm_to_vmem [thread:$0]  %s687_s3, 2048, %s45_s19, [#allocation7], %s577_s30, %s577_s30, %s578_s6  }
  0x33   :  { %569 = dma.done.wait [#allocation4], 256  }
  0x34   :  { %570 = vsyncadd [#allocation4], 4294967040 }
  0x35   :  { %571 = dma.done.wait [#allocation7], 4096  }
  0x36   :  { %572 = vsyncadd [#allocation7], 4294963200  ;;  %v70_v0 = vld [vmem:[#allocation6] sm:$0xff]  ;;  %v71_v1 = vld [vmem:[#allocation6 + $0x8] sm:$0xff]  ;;  %s580_s9 = smov [#allocation9]  }
  0x37   :  { %v72_v2 = vld [vmem:[#allocation6 + $0x10] sm:$0xff]  ;;  %v411_v3 = vpack.c.bf16 %v71_v1, %v70_v0  ;;  %v73_v4 = vld [vmem:[#allocation6 + $0x18] sm:$0xff]  ;;  %v74_v6 = vld [vmem:[#allocation6 + $0x20] sm:$0xff]  ;;  %s290_s10 = sshll.u32 %s580_s9, 4  ;;  %s291_s10 = int_to_ptr.vmem [resolvable:$true] %s290_s10 }
  0x38   :  { %v415_v5 = vpack.c.bf16 %v73_v4, %v72_v2  ;;  %v75_v7 = vld [vmem:[#allocation6 + $0x28] sm:$0xff]  ;;  %v76_v9 = vld [vmem:[#allocation6 + $0x30] sm:$0xff]  ;;  %v77_v10 = vld [vmem:[#allocation6 + $0x38] sm:$0xff]  ;;  %p552_p11 = scmp.lt.s32.totalorder %s291_s10, %s291_s10 }
  0x39   :  { %412 = vmatprep.subr.bf16.mxu0 %v411_v3  ;;  %v419_v8 = vpack.c.bf16 %v75_v7, %v74_v6  ;;  %v68_v11 = vld [vmem:[#allocation3] sm:$0xff]  ;;  %v174_v12 = vld [vmem:[#allocation8] sm:$0xff]  ;;  %v175_v13 = vld [vmem:[#allocation8 + $0x8] sm:$0xff]  ;;  %v423_v20 = vpack.c.bf16 %v77_v10, %v76_v9 }
  0x3a   :  { %414 = vmatpush3.bf16.msra.mxu0 %v411_v3  ;;  %373 = vmatprep.mubr.f32.mxu0 %v68_v11  ;;  %v176_v14 = vld [vmem:[#allocation8 + $0x10] sm:$0xff]  ;;  %v443_v15 = vpack.c.bf16 %v175_v13, %v174_v12  ;;  %v177_v16 = vld [vmem:[#allocation8 + $0x18] sm:$0xff]  ;;  %v178_v18 = vld [vmem:[#allocation8 + $0x20] sm:$0xff] }
  0x3b   :  { %416 = vmatprep.subr.bf16.mxu0 %v415_v5  ;;  %v447_v17 = vpack.c.bf16 %v177_v16, %v176_v14  ;;  %v179_v19 = vld [vmem:[#allocation8 + $0x28] sm:$0xff]  ;;  %v78_v21 = vld [vmem:[#allocation6 + $0x40] sm:$0xff]  ;;  %v180_v24 = vld [vmem:[#allocation8 + $0x30] sm:$0xff] }
  0x3c   :  { %444 = vmatprep.subr.bf16.mxu1 %v443_v15  ;;  %v79_v22 = vld [vmem:[#allocation6 + $0x48] sm:$0xff]  ;;  %v451_v23 = vpack.c.bf16 %v179_v19, %v178_v18  ;;  %v181_v25 = vld [vmem:[#allocation8 + $0x38] sm:$0xff]  ;;  %v80_v27 = vld [vmem:[#allocation6 + $0x50] sm:$0xff] }
  0x3d   :  { %446 = vmatpush3.bf16.msra.mxu1 %v443_v15  ;;  %v427_v26 = vpack.c.bf16 %v79_v22, %v78_v21  ;;  %v81_v28 = vld [vmem:[#allocation6 + $0x58] sm:$0xff]  ;;  %v455_v29 = vpack.c.bf16 %v181_v25, %v180_v24  ;;  %v182_v30 = vld [vmem:[#allocation8 + $0x40] sm:$0xff]  ;;  %v183_v31 = vld [vmem:[#allocation8 + $0x48] sm:$0xff] }
  0x3e   :  { %418 = vmatpush3.bf16.msra.mxu0 %v415_v5  ;;  %448 = vmatprep.subr.bf16.mxu1 %v447_v17  ;;  %v431_v32 = vpack.c.bf16 %v81_v28, %v80_v27  ;;  %v82_v33 = vld [vmem:[#allocation6 + $0x60] sm:$0xff]  ;;  %v83_v34 = vld [vmem:[#allocation6 + $0x68] sm:$0xff]  ;;  %v459_v35 = vpack.c.bf16 %v183_v31, %v182_v30  ;;  %v184_v36 = vld [vmem:[#allocation8 + $0x50] sm:$0xff] }
  0x3f   :  { %420 = vmatprep.subr.bf16.mxu0 %v419_v8  ;;  %v185_v37 = vld [vmem:[#allocation8 + $0x58] sm:$0xff]  ;;  %v435_v38 = vpack.c.bf16 %v83_v34, %v82_v33  ;;  %v84_v39 = vld [vmem:[#allocation6 + $0x70] sm:$0xff]  ;;  %v186_v44 = vld [vmem:[#allocation8 + $0x60] sm:$0xff] }
  0x40   :  { %v85_v40 = vld [vmem:[#allocation6 + $0x78] sm:$0xff]  ;;  %v463_v41 = vpack.c.bf16 %v185_v37, %v184_v36  ;;  %v187_v45 = vld [vmem:[#allocation8 + $0x68] sm:$0xff]  ;;  %v188_v47 = vld [vmem:[#allocation8 + $0x70] sm:$0xff] }
  0x41   :  { %450 = vmatpush3.bf16.msra.mxu1 %v447_v17  ;;  %v439_v42 = vpack.c.bf16 %v85_v40, %v84_v39  ;;  %v69_v43 = vld [vmem:[#allocation3 + $0x8] sm:$0xff]  ;;  %v467_v46 = vpack.c.bf16 %v187_v45, %v186_v44  ;;  %v303_v50 = vld [vmem:[%s686_s2] ss:$0 sm:$0xff]  ;;  %s547_s2 = scalar_lea.vmem %s291_s10, 256 }
  0x42   :  { %422 = vmatpush3.bf16.msra.mxu0 %v419_v8  ;;  %452 = vmatprep.subr.bf16.mxu1 %v451_v23  ;;  %v189_v48 = vld [vmem:[#allocation8 + $0x78] sm:$0xff]  ;;  %v304_v59 = vld [vmem:[%s688_s4] ss:$0 sm:$0xff]  ;;  %p548_p10 = scmp.ne.s32.totalorder %s291_s10, %s547_s2  ;;  %p553_p12 = scmp.lt.s32.totalorder %s547_s2, %s547_s2 }
  0x43   :  { %424 = vmatprep.subr.bf16.mxu0 %v423_v20  ;;  %v471_v49 = vpack.c.bf16 %v189_v48, %v188_v47 }
  0x44   :  { %p554_p13 = por %p553_p12, %p552_p11 }
  0x45   :  { %454 = vmatpush3.bf16.msra.mxu1 %v451_v23 }
  0x46   :  { %426 = vmatpush3.bf16.msra.mxu0 %v423_v20  ;;  %456 = vmatprep.subr.bf16.mxu1 %v455_v29  ;;  %p555_p0 = pnand %p554_p13, %p548_p10 }
  0x47   :  { %428 = vmatprep.subr.bf16.mxu0 %v427_v26 }
  0x49   :  { %458 = vmatpush3.bf16.msra.mxu1 %v455_v29 }
  0x4a   :  { %430 = vmatpush3.bf16.msra.mxu0 %v427_v26  ;;  %460 = vmatprep.subr.bf16.mxu1 %v459_v35 }
  0x4b   :  { %432 = vmatprep.subr.bf16.mxu0 %v431_v32 }
  0x4d   :  { %462 = vmatpush3.bf16.msra.mxu1 %v459_v35 }
  0x4e   :  { %434 = vmatpush3.bf16.msra.mxu0 %v431_v32  ;;  %464 = vmatprep.subr.bf16.mxu1 %v463_v41 }
  0x4f   :  { %436 = vmatprep.subr.bf16.mxu0 %v435_v38 }
  0x51   :  { %466 = vmatpush3.bf16.msra.mxu1 %v463_v41 }
  0x52   :  { %438 = vmatpush3.bf16.msra.mxu0 %v435_v38  ;;  %468 = vmatprep.subr.bf16.mxu1 %v467_v46 }
  0x53   :  { %440 = vmatprep.subr.bf16.mxu0 %v439_v42 }
  0x55   :  { %470 = vmatpush3.bf16.msra.mxu1 %v467_v46 }
  0x56   :  { %442 = vmatpush3.bf16.msra.mxu0 %v439_v42  ;;  %472 = vmatprep.subr.bf16.mxu1 %v471_v49 }
  0x59   :  { %374 = vmatmul.mubr.f32.vlgmr.msra.gmra.mrb[0].mxu0 %v69_v43  ;;  %474 = vmatpush3.bf16.msra.mxu1 %v471_v49 }
 0x12c   :  { %v375_v51 = vpop.f32.mrb[0].mxu0 }
 0x12d   :  { %v165_v52 = vadd.f32 %v375_v51, %v303_v50  ;;  %v159_v53 = vpop.f32.mrb[1].mxu0 }
 0x12e   :  { %v160_v54 = vadd.f32 %v303_v50, %v159_v53 }
 0x12f   :  { %v169_v55 = vmul.f32 0.01, %v165_v52 }
 0x130   :  { %v168_v56 = vmul.f32 0.01, %v160_v54 }
 0x131   :  { %v171_v58 = vmax.f32 %v165_v52, %v169_v55 }
 0x132   :  { %v170_v57 = vmax.f32 %v160_v54, %v168_v56 }
 0x134   :  { %408 = vmatprep.mubr.f32.mxu1 %v170_v57 }
 0x135   :  { %409 = vmatmul.mubr.f32.vlgmr.msra.gmra.mrb[0].mxu1 %v171_v58 }
 0x208   :  { %v410_v60 = vpop.f32.mrb[0].mxu1 }
 0x209   :  { %v282_v61 = vadd.f32 %v410_v60, %v304_v59  ;;  %v256_v62 = vpop.f32.mrb[1].mxu1 }
 0x20a   :  { %v281_v63 = vadd.f32 %v304_v59, %v256_v62 }
 0x20b   :  { %284 = vst [vmem:[#allocation9 + $0x8] sm:$0xff] %v282_v61 }
 0x20c   :  { %283 = vst [vmem:[#allocation9] sm:$0xff] %v281_v63 }
 0x20d   :  { %558 = shalt.err (!%p555_p0)
}
 0x20e   :  { %s559_s4 = scalar_lea.hbm %s689_s5, 256 }
 0x20f   :  { %p560_p1 = scmp.ne.s32.totalorder %s689_s5, %s559_s4  ;;  %p563_p2 = scmp.lt.u32.totalorder %s559_s4, %s689_s5 }
 0x211   :  { %p565_p3 = pnand %p563_p2, %p560_p1 }
 0x213   :  { %568 = shalt.err (!%p565_p3)
}
 0x214   :  { %296 = dma.vmem_to_hbm [thread:$0]  %s291_s10, 256, %s689_s5, [#allocation5], %s577_s30, %s577_s30, %s578_s6  }
 0x215   :  { %573 = dma.done.wait [#allocation5], 256  }
 0x216   :  { %574 = vsyncadd [#allocation5], 4294967040 }
 0x217   :  { %300 = vsyncpa [#allocation4], 1 }
 0x218   :  { %301 = vsyncpa [#allocation7], 1 }
 0x219   :  { %302 = vsyncpa [#allocation5], 1 }

// kernel: tpu_custom_call.1
= control target key start
LH: loop header
LB: loop body
LE: loop exit
PB: predicated region body
PF: predicated region fallthrough
CT: control target
= control target key end

     0   :  { %10 = vsyncpa [#allocation4], 0  ;;  %s684_s0 = inlined_call_operand.hbm [shape: f32[16,128], index: 0, kind: input, shape index: {}]   ;;  %s685_s1 = inlined_call_operand.hbm [shape: f32[128,128], index: 1, kind: input, shape index: {}]   ;;  %s686_s2 = inlined_call_operand.vmem [shape: f32[1,128], index: 2, kind: input, shape index: {}]   ;;  %s687_s3 = inlined_call_operand.hbm [shape: f32[128,128], index: 3, kind: input, shape index: {}]   ;;  %s688_s4 = inlined_call_operand.vmem [shape: f32[1,128], index: 4, kind: input, shape index: {}]   ;;  %s689_s5 = inlined_call_operand.hbm [shape: f32[16,128], index: 5, kind: output, shape index: {}]  }
   0x1   :  { %11 = vsyncpa [#allocation7], 0 }
   0x2   :  { %12 = vsyncpa [#allocation5], 0  ;;  %s575_s18 = smov [#allocation6]   ;;  %s576_s20 = smov [#allocation3]  }
   0x3   :  { %s30_s19 = sshll.u32 %s575_s18, 4  ;;  %s18_s21 = sshll.u32 %s576_s20, 4  ;;  %s31_s19 = int_to_ptr.vmem [resolvable:$true] %s30_s19  ;;  %s611_s21 = int_to_ptr.vmem [resolvable:$true] %s18_s21 }
   0x4   :  { %s481_s24 = scalar_lea.hbm %s685_s1, 2048 }
   0x5   :  { %p482_p0 = scmp.ne.s32.totalorder %s685_s1, %s481_s24  ;;  %p485_p1 = scmp.lt.u32.totalorder %s481_s24, %s685_s1 }
   0x7   :  { %p487_p2 = pnand %p485_p1, %p482_p0 }
   0x9   :  { %490 = shalt.err (!%p487_p2)
}
   0xa   :  { %s491_s29 = scalar_lea.vmem %s31_s19, 2048  ;;  %p496_p4 = scmp.lt.s32.totalorder %s31_s19, %s31_s19 }
   0xb   :  { %p492_p3 = scmp.ne.s32.totalorder %s31_s19, %s491_s29  ;;  %p497_p5 = scmp.lt.s32.totalorder %s491_s29, %s491_s29 }
   0xd   :  { %p498_p6 = por %p497_p5, %p496_p4 }
   0xf   :  { %p499_p7 = pnand %p498_p6, %p492_p3 }
  0x11   :  { %502 = shalt.err (!%p499_p7)
}
  0x12   :  { %s577_s30 = smov 128   ;;  %s578_s6 = smov 8  }
  0x13   :  { %36 = dma.hbm_to_vmem [thread:$0]  %s685_s1, 2048, %s31_s19, [#allocation7], %s577_s30, %s577_s30, %s578_s6  }
  0x14   :  { %s503_s11 = scalar_lea.hbm %s684_s0, 256 }
  0x15   :  { %p504_p8 = scmp.ne.s32.totalorder %s684_s0, %s503_s11  ;;  %p507_p9 = scmp.lt.u32.totalorder %s503_s11, %s684_s0 }
  0x17   :  { %p509_p10 = pnand %p507_p9, %p504_p8 }
  0x19   :  { %512 = shalt.err (!%p509_p10)
}
  0x1a   :  { %s513_s16 = scalar_lea.vmem %s611_s21, 256  ;;  %p518_p12 = scmp.lt.s32.totalorder %s611_s21, %s611_s21 }
  0x1b   :  { %p514_p11 = scmp.ne.s32.totalorder %s611_s21, %s513_s16  ;;  %p519_p13 = scmp.lt.s32.totalorder %s513_s16, %s513_s16 }
  0x1d   :  { %p520_p0 = por %p519_p13, %p518_p12 }
  0x1f   :  { %p521_p1 = pnand %p520_p0, %p514_p11 }
  0x21   :  { %524 = shalt.err (!%p521_p1)
}
  0x22   :  { %24 = dma.hbm_to_vmem [thread:$0]  %s684_s0, 256, %s611_s21, [#allocation4], %s577_s30, %s577_s30, %s578_s6  }
  0x23   :  { %s579_s18 = smov [#allocation8]   ;;  %s525_s23 = scalar_lea.hbm %s687_s3, 2048 }
  0x24   :  { %s44_s19 = sshll.u32 %s579_s18, 4  ;;  %p526_p2 = scmp.ne.s32.totalorder %s687_s3, %s525_s23  ;;  %s45_s19 = int_to_ptr.vmem [resolvable:$true] %s44_s19 }
  0x25   :  { %p529_p3 = scmp.lt.u32.totalorder %s525_s23, %s687_s3 }
  0x27   :  { %p531_p4 = pnand %p529_p3, %p526_p2 }
  0x29   :  { %534 = shalt.err (!%p531_p4)
}
  0x2a   :  { %s535_s28 = scalar_lea.vmem %s45_s19, 2048  ;;  %p540_p6 = scmp.lt.s32.totalorder %s45_s19, %s45_s19 }
  0x2b   :  { %p536_p5 = scmp.ne.s32.totalorder %s45_s19, %s535_s28  ;;  %p541_p7 = scmp.lt.s32.totalorder %s535_s28, %s535_s28 }
  0x2d   :  { %p542_p8 = por %p541_p7, %p540_p6 }
  0x2f   :  { %p543_p9 = pnand %p542_p8, %p536_p5 }
  0x31   :  { %546 = shalt.err (!%p543_p9)
}
  0x32   :  { %50 = dma.hbm_to_vmem [thread:$0]  %s687_s3, 2048, %s45_s19, [#allocation7], %s577_s30, %s577_s30, %s578_s6  }
  0x33   :  { %569 = dma.done.wait [#allocation4], 256  }
  0x34   :  { %570 = vsyncadd [#allocation4], 4294967040 }
  0x35   :  { %571 = dma.done.wait [#allocation7], 4096  }
  0x36   :  { %572 = vsyncadd [#allocation7], 4294963200  ;;  %v70_v0 = vld [vmem:[#allocation6] sm:$0xff]  ;;  %v71_v1 = vld [vmem:[#allocation6 + $0x8] sm:$0xff]  ;;  %s580_s9 = smov [#allocation9]  }
  0x37   :  { %v72_v2 = vld [vmem:[#allocation6 + $0x10] sm:$0xff]  ;;  %v411_v3 = vpack.c.bf16 %v71_v1, %v70_v0  ;;  %v73_v4 = vld [vmem:[#allocation6 + $0x18] sm:$0xff]  ;;  %v74_v6 = vld [vmem:[#allocation6 + $0x20] sm:$0xff]  ;;  %s290_s10 = sshll.u32 %s580_s9, 4  ;;  %s291_s10 = int_to_ptr.vmem [resolvable:$true] %s290_s10 }
  0x38   :  { %v415_v5 = vpack.c.bf16 %v73_v4, %v72_v2  ;;  %v75_v7 = vld [vmem:[#allocation6 + $0x28] sm:$0xff]  ;;  %v76_v9 = vld [vmem:[#allocation6 + $0x30] sm:$0xff]  ;;  %v77_v10 = vld [vmem:[#allocation6 + $0x38] sm:$0xff]  ;;  %p552_p11 = scmp.lt.s32.totalorder %s291_s10, %s291_s10 }
  0x39   :  { %412 = vmatprep.subr.bf16.mxu0 %v411_v3  ;;  %v419_v8 = vpack.c.bf16 %v75_v7, %v74_v6  ;;  %v68_v11 = vld [vmem:[#allocation3] sm:$0xff]  ;;  %v174_v12 = vld [vmem:[#allocation8] sm:$0xff]  ;;  %v175_v13 = vld [vmem:[#allocation8 + $0x8] sm:$0xff]  ;;  %v423_v20 = vpack.c.bf16 %v77_v10, %v76_v9 }
  0x3a   :  { %414 = vmatpush3.bf16.msra.mxu0 %v411_v3  ;;  %373 = vmatprep.mubr.f32.mxu0 %v68_v11  ;;  %v176_v14 = vld [vmem:[#allocation8 + $0x10] sm:$0xff]  ;;  %v443_v15 = vpack.c.bf16 %v175_v13, %v174_v12  ;;  %v177_v16 = vld [vmem:[#allocation8 + $0x18] sm:$0xff]  ;;  %v178_v18 = vld [vmem:[#allocation8 + $0x20] sm:$0xff] }
  0x3b   :  { %416 = vmatprep.subr.bf16.mxu0 %v415_v5  ;;  %v447_v17 = vpack.c.bf16 %v177_v16, %v176_v14  ;;  %v179_v19 = vld [vmem:[#allocation8 + $0x28] sm:$0xff]  ;;  %v78_v21 = vld [vmem:[#allocation6 + $0x40] sm:$0xff]  ;;  %v180_v24 = vld [vmem:[#allocation8 + $0x30] sm:$0xff] }
  0x3c   :  { %444 = vmatprep.subr.bf16.mxu1 %v443_v15  ;;  %v79_v22 = vld [vmem:[#allocation6 + $0x48] sm:$0xff]  ;;  %v451_v23 = vpack.c.bf16 %v179_v19, %v178_v18  ;;  %v181_v25 = vld [vmem:[#allocation8 + $0x38] sm:$0xff]  ;;  %v80_v27 = vld [vmem:[#allocation6 + $0x50] sm:$0xff] }
  0x3d   :  { %446 = vmatpush3.bf16.msra.mxu1 %v443_v15  ;;  %v427_v26 = vpack.c.bf16 %v79_v22, %v78_v21  ;;  %v81_v28 = vld [vmem:[#allocation6 + $0x58] sm:$0xff]  ;;  %v455_v29 = vpack.c.bf16 %v181_v25, %v180_v24  ;;  %v182_v30 = vld [vmem:[#allocation8 + $0x40] sm:$0xff]  ;;  %v183_v31 = vld [vmem:[#allocation8 + $0x48] sm:$0xff] }
  0x3e   :  { %418 = vmatpush3.bf16.msra.mxu0 %v415_v5  ;;  %448 = vmatprep.subr.bf16.mxu1 %v447_v17  ;;  %v431_v32 = vpack.c.bf16 %v81_v28, %v80_v27  ;;  %v82_v33 = vld [vmem:[#allocation6 + $0x60] sm:$0xff]  ;;  %v83_v34 = vld [vmem:[#allocation6 + $0x68] sm:$0xff]  ;;  %v459_v35 = vpack.c.bf16 %v183_v31, %v182_v30  ;;  %v184_v36 = vld [vmem:[#allocation8 + $0x50] sm:$0xff] }
  0x3f   :  { %420 = vmatprep.subr.bf16.mxu0 %v419_v8  ;;  %v185_v37 = vld [vmem:[#allocation8 + $0x58] sm:$0xff]  ;;  %v435_v38 = vpack.c.bf16 %v83_v34, %v82_v33  ;;  %v84_v39 = vld [vmem:[#allocation6 + $0x70] sm:$0xff]  ;;  %v186_v44 = vld [vmem:[#allocation8 + $0x60] sm:$0xff] }
  0x40   :  { %v85_v40 = vld [vmem:[#allocation6 + $0x78] sm:$0xff]  ;;  %v463_v41 = vpack.c.bf16 %v185_v37, %v184_v36  ;;  %v187_v45 = vld [vmem:[#allocation8 + $0x68] sm:$0xff]  ;;  %v188_v47 = vld [vmem:[#allocation8 + $0x70] sm:$0xff] }
  0x41   :  { %450 = vmatpush3.bf16.msra.mxu1 %v447_v17  ;;  %v439_v42 = vpack.c.bf16 %v85_v40, %v84_v39  ;;  %v69_v43 = vld [vmem:[#allocation3 + $0x8] sm:$0xff]  ;;  %v467_v46 = vpack.c.bf16 %v187_v45, %v186_v44  ;;  %v303_v50 = vld [vmem:[%s686_s2] ss:$0 sm:$0xff]  ;;  %s547_s2 = scalar_lea.vmem %s291_s10, 256 }
  0x42   :  { %422 = vmatpush3.bf16.msra.mxu0 %v419_v8  ;;  %452 = vmatprep.subr.bf16.mxu1 %v451_v23  ;;  %v189_v48 = vld [vmem:[#allocation8 + $0x78] sm:$0xff]  ;;  %v304_v59 = vld [vmem:[%s688_s4] ss:$0 sm:$0xff]  ;;  %p548_p10 = scmp.ne.s32.totalorder %s291_s10, %s547_s2  ;;  %p553_p12 = scmp.lt.s32.totalorder %s547_s2, %s547_s2 }
  0x43   :  { %424 = vmatprep.subr.bf16.mxu0 %v423_v20  ;;  %v471_v49 = vpack.c.bf16 %v189_v48, %v188_v47 }
  0x44   :  { %p554_p13 = por %p553_p12, %p552_p11 }
  0x45   :  { %454 = vmatpush3.bf16.msra.mxu1 %v451_v23 }
  0x46   :  { %426 = vmatpush3.bf16.msra.mxu0 %v423_v20  ;;  %456 = vmatprep.subr.bf16.mxu1 %v455_v29  ;;  %p555_p0 = pnand %p554_p13, %p548_p10 }
  0x47   :  { %428 = vmatprep.subr.bf16.mxu0 %v427_v26 }
  0x49   :  { %458 = vmatpush3.bf16.msra.mxu1 %v455_v29 }
  0x4a   :  { %430 = vmatpush3.bf16.msra.mxu0 %v427_v26  ;;  %460 = vmatprep.subr.bf16.mxu1 %v459_v35 }
  0x4b   :  { %432 = vmatprep.subr.bf16.mxu0 %v431_v32 }
  0x4d   :  { %462 = vmatpush3.bf16.msra.mxu1 %v459_v35 }
  0x4e   :  { %434 = vmatpush3.bf16.msra.mxu0 %v431_v32  ;;  %464 = vmatprep.subr.bf16.mxu1 %v463_v41 }
  0x4f   :  { %436 = vmatprep.subr.bf16.mxu0 %v435_v38 }
  0x51   :  { %466 = vmatpush3.bf16.msra.mxu1 %v463_v41 }
  0x52   :  { %438 = vmatpush3.bf16.msra.mxu0 %v435_v38  ;;  %468 = vmatprep.subr.bf16.mxu1 %v467_v46 }
  0x53   :  { %440 = vmatprep.subr.bf16.mxu0 %v439_v42 }
  0x55   :  { %470 = vmatpush3.bf16.msra.mxu1 %v467_v46 }
  0x56   :  { %442 = vmatpush3.bf16.msra.mxu0 %v439_v42  ;;  %472 = vmatprep.subr.bf16.mxu1 %v471_v49 }
  0x59   :  { %374 = vmatmul.mubr.f32.vlgmr.msra.gmra.mrb[0].mxu0 %v69_v43  ;;  %474 = vmatpush3.bf16.msra.mxu1 %v471_v49 }
 0x12c   :  { %v375_v51 = vpop.f32.mrb[0].mxu0 }
 0x12d   :  { %v165_v52 = vadd.f32 %v375_v51, %v303_v50  ;;  %v159_v53 = vpop.f32.mrb[1].mxu0 }
 0x12e   :  { %v160_v54 = vadd.f32 %v303_v50, %v159_v53 }
 0x12f   :  { %v169_v55 = vmul.f32 0.01, %v165_v52 }
 0x130   :  { %v168_v56 = vmul.f32 0.01, %v160_v54 }
 0x131   :  { %v171_v58 = vmax.f32 %v165_v52, %v169_v55 }
 0x132   :  { %v170_v57 = vmax.f32 %v160_v54, %v168_v56 }
 0x134   :  { %408 = vmatprep.mubr.f32.mxu1 %v170_v57 }
 0x135   :  { %409 = vmatmul.mubr.f32.vlgmr.msra.gmra.mrb[0].mxu1 %v171_v58 }
 0x208   :  { %v410_v60 = vpop.f32.mrb[0].mxu1 }
 0x209   :  { %v282_v61 = vadd.f32 %v410_v60, %v304_v59  ;;  %v256_v62 = vpop.f32.mrb[1].mxu1 }
 0x20a   :  { %v281_v63 = vadd.f32 %v304_v59, %v256_v62 }
 0x20b   :  { %284 = vst [vmem:[#allocation9 + $0x8] sm:$0xff] %v282_v61 }
 0x20c   :  { %283 = vst [vmem:[#allocation9] sm:$0xff] %v281_v63 }
 0x20d   :  { %558 = shalt.err (!%p555_p0)
}
 0x20e   :  { %s559_s4 = scalar_lea.hbm %s689_s5, 256 }
 0x20f   :  { %p560_p1 = scmp.ne.s32.totalorder %s689_s5, %s559_s4  ;;  %p563_p2 = scmp.lt.u32.totalorder %s559_s4, %s689_s5 }
 0x211   :  { %p565_p3 = pnand %p563_p2, %p560_p1 }
 0x213   :  { %568 = shalt.err (!%p565_p3)
}
 0x214   :  { %296 = dma.vmem_to_hbm [thread:$0]  %s291_s10, 256, %s689_s5, [#allocation5], %s577_s30, %s577_s30, %s578_s6  }
 0x215   :  { %573 = dma.done.wait [#allocation5], 256  }
 0x216   :  { %574 = vsyncadd [#allocation5], 4294967040 }
 0x217   :  { %300 = vsyncpa [#allocation4], 1 }
 0x218   :  { %301 = vsyncpa [#allocation7], 1 }
 0x219   :  { %302 = vsyncpa [#allocation5], 1 }

</bundles_post_ra>
